<compile_context>
chip_gen: v7x
topology: tpu7x:2x2x1
jax: 0.10.0
libtpu: 0.0.40
codegen_flags: <defaults>
</compile_context>

<pallas_src>
import jax
import jax.numpy as jnp
from jax.experimental import pallas as pl
from jax.experimental.pallas import tpu as pltpu


# ----------------------------- kernel -----------------------------------------


def linear_kernel(x_ref, wa_ref, ba_ref, wb_ref, wc_ref, bd_ref, o_ref):
    # x_ref block: (TB, L*Fin)  -- TB samples, flattened (input_len, input_feature)
    x = x_ref[...]
    # l0 (with "- series_last" folded into WA) :  u = (x - last) @ W0^T + b0
    u = jnp.dot(x, wa_ref[...], preferred_element_type=jnp.float32) + ba_ref[...]
    # l1: SiLU
    v = u * jax.nn.sigmoid(u)
    # l2 + "+ series_last" + l3 (1x1 conv) + l4 (split_linear), all folded:
    #   out = v @ WB + x @ WC + bD     -> (TB, Lout*Fout), column order (o, k)
    out = (jnp.dot(v, wb_ref[...], preferred_element_type=jnp.float32)
           + jnp.dot(x, wc_ref[...], preferred_element_type=jnp.float32)
           + bd_ref[...])
    o_ref[...] = out


# --------------------------- wrapper / folding ---------------------------------


def _round_up(a, m):
    return ((a + m - 1) // m) * m


def _fold_params(params, L, Fin, Fout, Lout):
    """Fold the module's five layers into three matrices + two biases (done once,
    outside the kernel; grid-invariant)."""
    w0, b0, w2, b2, w3, b3, w4, b4 = params

    # --- stage A: y0 = (x - series_last) @ w0.T + b0, on flat (l*Fin + c) columns ---
    # w0_eff[l, l'] = w0[l, l'] - delta(l', L-1) * sum_{l''} w0[l, l'']
    w0_eff = w0.at[:, L - 1].add(-jnp.sum(w0, axis=1))                 # (L, L)
    eye_f = jnp.eye(Fin, dtype=w0.dtype)
    # WA[(l'*Fin+c'), (l*Fin+c)] = delta(c, c') * w0_eff[l, l']
    wa = jnp.einsum('lm,ab->malb', w0_eff, eye_f).reshape(L * Fin, L * Fin)
    ba = jnp.repeat(b0, Fin).reshape(1, L * Fin)                       # bA[l*Fin+c] = b0[l]

    # --- stage B: v = SiLU(y0) goes through  l2 -> (+last) -> l3 -> l4 -> permute ---
    # WB[(l'*Fin+c), (o*Fout+k)] = sum_l w4[k,o,l] * w3[k,c] * w2[l,l']
    wb = jnp.einsum('kol,kc,lm->mcok', w4, w3, w2).reshape(L * Fin, Lout * Fout)

    # residual "+ series_last" pushed through l3/l4:
    w4sum = jnp.sum(w4, axis=-1)                                       # (Fout, Lout)
    wc_last = jnp.einsum('kc,ko->cok', w3, w4sum)                      # (Fin, Lout, Fout)
    wc = jnp.zeros((L, Fin, Lout, Fout), w0.dtype).at[L - 1].set(wc_last)
    wc = wc.reshape(L * Fin, Lout * Fout)

    # bias terms of l2, l3, l4 pushed through to the output (column order (o, k)):
    s3 = jnp.sum(w3, axis=1)                                           # (Fout,)
    t = jnp.einsum('kol,l->ko', w4, b2)                                # (Fout, Lout)
    bd_ko = s3[:, None] * t + b3[:, None] * w4sum + b4                 # (Fout, Lout)
    bd = bd_ko.T.reshape(1, Lout * Fout)
    return wa, ba, wb, wc, bd


def linear_forward(x, params, *, tb=None):
    """x: (B, L, Fin) float32 -> (B, Lout, Fout) float32 (matches PyTorch forward)."""
    w0, b0, w2, b2, w3, b3, w4, b4 = params
    B, L, Fin = x.shape
    Fout, Lout, _ = w4.shape

    # ---- batch tiling: TB samples per grid step ----
    if tb is None:
        if B <= 8:
            TB = B                                   # single block == full array
        else:
            # multiple of 8 (sublane-aligned blocks), >= 2 steps for v7x megacore,
            # capped so the x block stays small even on v7x's 64 MiB VMEM.
            TB = min(2048, _round_up(pl.cdiv(B, 2), 8))
    else:
        TB = tb
    G = pl.cdiv(B, TB)
    Bp = G * TB

    # ---- one-time wrapper-side layout / weight prep (no per-step XLU work) ----
    x_flat = x.reshape(B, L * Fin)                   # column index = l*Fin + c
    if Bp != B:
        x_flat = jnp.pad(x_flat, ((0, Bp - B), (0, 0)))
    wa, ba, wb, wc, bd = _fold_params(params, L, Fin, Fout, Lout)

    def fixed(shape):
        return pl.BlockSpec(shape, lambda i, n=len(shape): (0,) * n)

    out_flat = pl.pallas_call(
        linear_kernel,
        out_shape=jax.ShapeDtypeStruct((Bp, Lout * Fout), jnp.float32),
        grid=(G,),
        in_specs=[
            pl.BlockSpec((TB, L * Fin), lambda i: (i, 0)),   # x, TB samples per step
            fixed((L * Fin, L * Fin)), fixed((1, L * Fin)),  # WA, bA
            fixed((L * Fin, Lout * Fout)),                   # WB
            fixed((L * Fin, Lout * Fout)),                   # WC (residual path)
            fixed((1, Lout * Fout)),                         # bD
        ],
        out_specs=pl.BlockSpec((TB, Lout * Fout), lambda i: (i, 0)),
        compiler_params=pltpu.CompilerParams(dimension_semantics=("parallel",)),
    )(x_flat, wa, ba, wb, wc, bd)

    # columns are ordered (o, k) -> reshape gives the final permuted (B, Lout, Fout)
    return out_flat[:B].reshape(B, Lout, Fout)


# ------------------------------ reference --------------------------------------


def reference_forward(x, params):
    """Pure-JAX reference mirroring the PyTorch forward exactly (unfolded)."""
    w0, b0, w2, b2, w3, b3, w4, b4 = params
    xt = jnp.transpose(x, (0, 2, 1))               # (B, Fin, L)
    last = xt[:, :, -1:]
    y = xt - last
    y = y @ w0.T + b0
    y = y * jax.nn.sigmoid(y)
    y = y @ w2.T + b2
    y = y + last
    z = jnp.einsum('oc,bcl->bol', w3, y) + b3[None, :, None]      # (B, Fout, L)
    out = jnp.einsum('bcl,col->bco', z, w4) + b4[None, :, :]      # (B, Fout, Lout)
    return jnp.transpose(out, (0, 2, 1))                          # (B, Lout, Fout)


def init_params(key, L, Fin, Fout, Lout):
    """Deterministic PyTorch-style uniform(-1/sqrt(fan_in), 1/sqrt(fan_in)) init."""
    ks = jax.random.split(key, 8)

    def u(k, shape, fan_in):
        bound = 1.0 / (fan_in ** 0.5)
        return jax.random.uniform(k, shape, jnp.float32, -bound, bound)

    w0 = u(ks[0], (L, L), L);          b0 = u(ks[1], (L,), L)
    w2 = u(ks[2], (L, L), L);          b2 = u(ks[3], (L,), L)
    w3 = u(ks[4], (Fout, Fin), Fin);   b3 = u(ks[5], (Fout,), Fin)
    w4 = u(ks[6], (Fout, Lout, L), L); b4 = u(ks[7], (Fout, Lout), L)
    return (w0, b0, w2, b2, w3, b3, w4, b4)


if __name__ == "__main__":
    # module hyper-params implied by the forward:
    L, Fin, Fout, Lout = 16, 4, 3, 8   # input_len, input_feature, output_feature, output_len

    key = jax.random.PRNGKey(0)
    kx, kp, kx2 = jax.random.split(key, 3)
    params = init_params(kp, L, Fin, Fout, Lout)

    # small-batch check (single grid step)
    B = 2
    x = jax.random.normal(kx, (B, L, Fin), dtype=jnp.float32)
    out = jax.block_until_ready(linear_forward(x, params))
    ref = reference_forward(x, params)
    assert out.shape == (B, Lout, Fout), out.shape
    assert jnp.allclose(out, ref, rtol=1e-3, atol=1e-3), float(jnp.max(jnp.abs(out - ref)))

    # multi-step check (grid >= 2, exercises batch tiling + padding path)
    B2 = 20
    x2 = jax.random.normal(kx2, (B2, L, Fin), dtype=jnp.float32)
    out2 = jax.block_until_ready(linear_forward(x2, params))
    ref2 = reference_forward(x2, params)
    assert out2.shape == (B2, Lout, Fout), out2.shape
    assert jnp.allclose(out2, ref2, rtol=1e-3, atol=1e-3), float(jnp.max(jnp.abs(out2 - ref2)))

    print("KERNEL_OK")
</pallas_src>

<mosaic_0001>
module attributes {stable_mosaic.version = 11 : i64} {
  func.func @linear_kernel(%arg0: i32, %arg1: memref<2x64xf32, #tpu.memory_space<vmem>>, %arg2: memref<64x64xf32, #tpu.memory_space<vmem>>, %arg3: memref<1x64xf32, #tpu.memory_space<vmem>>, %arg4: memref<64x24xf32, #tpu.memory_space<vmem>>, %arg5: memref<64x24xf32, #tpu.memory_space<vmem>>, %arg6: memref<1x24xf32, #tpu.memory_space<vmem>>, %arg7: memref<2x24xf32, #tpu.memory_space<vmem>>) attributes {dimension_semantics = [#tpu.dimension_semantics<parallel>], iteration_bounds = array<i64: 1>, scalar_prefetch = 0 : i64, scratch_operands = 0 : i64, tpu.core_type = #tpu.core_type<tc>, window_params = [{transform_indices = @transform_0, window_bounds = array<i64: 2, 64>}, {pipeline_mode = #tpu.pipeline_mode<synchronous>, transform_indices = @transform_1, window_bounds = array<i64: 64, 64>}, {pipeline_mode = #tpu.pipeline_mode<synchronous>, transform_indices = @transform_2, window_bounds = array<i64: 1, 64>}, {pipeline_mode = #tpu.pipeline_mode<synchronous>, transform_indices = @transform_3, window_bounds = array<i64: 64, 24>}, {pipeline_mode = #tpu.pipeline_mode<synchronous>, transform_indices = @transform_4, window_bounds = array<i64: 64, 24>}, {pipeline_mode = #tpu.pipeline_mode<synchronous>, transform_indices = @transform_5, window_bounds = array<i64: 1, 24>}, {transform_indices = @transform_6, window_bounds = array<i64: 2, 24>}]} {
    %c0 = arith.constant 0 : index
    %c0_0 = arith.constant 0 : index
    %0 = vector.load %arg1[%c0, %c0_0] : memref<2x64xf32, #tpu.memory_space<vmem>>, vector<2x64xf32>
    %c0_1 = arith.constant 0 : index
    %c0_2 = arith.constant 0 : index
    %1 = vector.load %arg2[%c0_1, %c0_2] : memref<64x64xf32, #tpu.memory_space<vmem>>, vector<64x64xf32>
    %cst = arith.constant dense<0.000000e+00> : vector<2x64xf32>
    %2 = tpu.matmul %0, %1, %cst {dimension_numbers = #tpu.dot_dimension_numbers<[1], [0], [0], [1], [0, 0, 1, 1], [], []>} : vector<2x64xf32>, vector<64x64xf32>, vector<2x64xf32> -> vector<2x64xf32>
    %c0_3 = arith.constant 0 : index
    %c0_4 = arith.constant 0 : index
    %3 = vector.load %arg3[%c0_3, %c0_4] : memref<1x64xf32, #tpu.memory_space<vmem>>, vector<1x64xf32>
    %4 = vector.broadcast %3 : vector<1x64xf32> to vector<2x64xf32>
    %5 = arith.addf %2, %4 : vector<2x64xf32>
    %6 = arith.negf %5 : vector<2x64xf32>
    %7 = math.exp %6 : vector<2x64xf32>
    %cst_5 = arith.constant 1.000000e+00 : f32
    %8 = vector.broadcast %cst_5 : f32 to vector<2x64xf32>
    %9 = arith.addf %8, %7 : vector<2x64xf32>
    %10 = arith.divf %8, %9 : vector<2x64xf32>
    %11 = arith.mulf %5, %10 : vector<2x64xf32>
    %c0_6 = arith.constant 0 : index
    %c0_7 = arith.constant 0 : index
    %12 = vector.load %arg4[%c0_6, %c0_7] : memref<64x24xf32, #tpu.memory_space<vmem>>, vector<64x24xf32>
    %cst_8 = arith.constant dense<0.000000e+00> : vector<2x24xf32>
    %13 = tpu.matmul %11, %12, %cst_8 {dimension_numbers = #tpu.dot_dimension_numbers<[1], [0], [0], [1], [0, 0, 1, 1], [], []>} : vector<2x64xf32>, vector<64x24xf32>, vector<2x24xf32> -> vector<2x24xf32>
    %c0_9 = arith.constant 0 : index
    %c0_10 = arith.constant 0 : index
    %14 = vector.load %arg5[%c0_9, %c0_10] : memref<64x24xf32, #tpu.memory_space<vmem>>, vector<64x24xf32>
    %cst_11 = arith.constant dense<0.000000e+00> : vector<2x24xf32>
    %15 = tpu.matmul %0, %14, %cst_11 {dimension_numbers = #tpu.dot_dimension_numbers<[1], [0], [0], [1], [0, 0, 1, 1], [], []>} : vector<2x64xf32>, vector<64x24xf32>, vector<2x24xf32> -> vector<2x24xf32>
    %16 = arith.addf %13, %15 : vector<2x24xf32>
    %c0_12 = arith.constant 0 : index
    %c0_13 = arith.constant 0 : index
    %17 = vector.load %arg6[%c0_12, %c0_13] : memref<1x24xf32, #tpu.memory_space<vmem>>, vector<1x24xf32>
    %18 = vector.broadcast %17 : vector<1x24xf32> to vector<2x24xf32>
    %19 = arith.addf %16, %18 : vector<2x24xf32>
    %c0_14 = arith.constant 0 : index
    %c0_15 = arith.constant 0 : index
    %20 = vector.load %arg7[%c0_14, %c0_15] : memref<2x24xf32, #tpu.memory_space<vmem>>, vector<2x24xf32>
    tpu.vector_store %arg7[%c0_14, %c0_15], %19 {strides = array<i32>} : memref<2x24xf32, #tpu.memory_space<vmem>>, vector<2x24xf32>,
    return
  }
  func.func @transform_0(%arg0: i32) -> (i32, i32) {
    %c0_i32 = arith.constant 0 : i32
    %c0_i32_0 = arith.constant 0 : i32
    return %arg0, %c0_i32 : i32, i32
  }
  func.func @transform_1(%arg0: i32) -> (i32, i32) {
    %c0_i32 = arith.constant 0 : i32
    %c0_i32_0 = arith.constant 0 : i32
    %c0_i32_1 = arith.constant 0 : i32
    return %c0_i32, %c0_i32_0 : i32, i32
  }
  func.func @transform_2(%arg0: i32) -> (i32, i32) {
    %c0_i32 = arith.constant 0 : i32
    %c0_i32_0 = arith.constant 0 : i32
    %c0_i32_1 = arith.constant 0 : i32
    return %c0_i32, %c0_i32_0 : i32, i32
  }
  func.func @transform_3(%arg0: i32) -> (i32, i32) {
    %c0_i32 = arith.constant 0 : i32
    %c0_i32_0 = arith.constant 0 : i32
    %c0_i32_1 = arith.constant 0 : i32
    return %c0_i32, %c0_i32_0 : i32, i32
  }
  func.func @transform_4(%arg0: i32) -> (i32, i32) {
    %c0_i32 = arith.constant 0 : i32
    %c0_i32_0 = arith.constant 0 : i32
    %c0_i32_1 = arith.constant 0 : i32
    return %c0_i32, %c0_i32_0 : i32, i32
  }
  func.func @transform_5(%arg0: i32) -> (i32, i32) {
    %c0_i32 = arith.constant 0 : i32
    %c0_i32_0 = arith.constant 0 : i32
    %c0_i32_1 = arith.constant 0 : i32
    return %c0_i32, %c0_i32_0 : i32, i32
  }
  func.func @transform_6(%arg0: i32) -> (i32, i32) {
    %c0_i32 = arith.constant 0 : i32
    %c0_i32_0 = arith.constant 0 : i32
    return %arg0, %c0_i32 : i32, i32
  }
}

</mosaic_0001>

<bundles_post_ra>
// kernel: tpu_custom_call.1
= control target key start
LH: loop header
LB: loop body
LE: loop exit
PB: predicated region body
PF: predicated region fallthrough
CT: control target
= control target key end

     0   :  { %v462_v3 = vmov 0.0|0.0   ;;  %vm463_vm0 = vmmov 0   ;;  %v464_v6 = vmov 0.0   ;;  %s600_s0 = inlined_call_operand.vmem [shape: f32[2,64], index: 0, kind: input, shape index: {}]   ;;  %s601_s1 = inlined_call_operand.vmem [shape: f32[64,64], index: 1, kind: input, shape index: {}]   ;;  %s602_s2 = inlined_call_operand.vmem [shape: f32[1,64], index: 2, kind: input, shape index: {}]   ;;  %s603_s3 = inlined_call_operand.vmem [shape: f32[64,24], index: 3, kind: input, shape index: {}]   ;;  %s604_s4 = inlined_call_operand.vmem [shape: f32[64,24], index: 4, kind: input, shape index: {}]   ;;  %s605_s5 = inlined_call_operand.vmem [shape: f32[1,24], index: 5, kind: input, shape index: {}]   ;;  %s606_s6 = inlined_call_operand.hbm [shape: f32[2,24], index: 6, kind: output, shape index: {}]  }
   0x1   :  { %v25_v0 = vld [vmem:[%s601_s1] sm:$0xff]  ;;  %v26_v1 = vld [vmem:[%s601_s1 + $0x8] sm:$0xff]  ;;  %v27_v2 = vld [vmem:[%s601_s1 + $0x10] sm:$0xff]  ;;  %394 = vmatprep.subr.bf16.mxu0 %v462_v3  ;;  %353 = vmatprep.mubr.msk.f32.mxu0 %vm463_vm0, %v464_v6 }
   0x2   :  { %v395_v4 = vpack.c.bf16 %v26_v1, %v25_v0  ;;  %v28_v5 = vld [vmem:[%s601_s1 + $0x18] sm:$0xff]  ;;  %406 = vmatprep.subr.bf16.mxu1 %v462_v3  ;;  %372 = vmatprep.mubr.msk.f32.mxu1 %vm463_vm0, %v464_v6 }
   0x3   :  { %v398_v7 = vpack.c.bf16 %v28_v5, %v27_v2 }
   0x4   :  { %396 = vmatpush3.bf16.msra.mxu0 %v395_v4 }
   0x5   :  { %11 = vsyncpa [#allocation3], 0  ;;  %397 = vmatprep.subr.bf16.mxu0 %v462_v3  ;;  %v29_v8 = vld [vmem:[%s601_s1 + $0x20] sm:$0xff]  ;;  %v30_v9 = vld [vmem:[%s601_s1 + $0x28] sm:$0xff]  ;;  %vm40_vm1 = vcmask 523264   ;;  %vm288_vm2 = vcmask 189440  }
   0x6   :  { %v401_v10 = vpack.c.bf16 %v30_v9, %v29_v8  ;;  %v31_v11 = vld [vmem:[%s601_s1 + $0x30] sm:$0xff]  ;;  %v32_v12 = vld [vmem:[%s601_s1 + $0x38] sm:$0xff]  ;;  %v24_v14 = vld [vmem:[%s600_s0] sm:$0x3] }
   0x7   :  { %v404_v13 = vpack.c.bf16 %v32_v12, %v31_v11  ;;  %v129_v15 = vld [vmem:[%s604_s4] sm:$0xff]  ;;  %v130_v16 = vld [vmem:[%s604_s4 + $0x8] sm:$0xff]  ;;  %v131_v21 = vld [vmem:[%s604_s4 + $0x10] sm:$0xff] }
   0x8   :  { %399 = vmatpush3.bf16.msra.mxu0 %v398_v7  ;;  %v407_v17 = vpack.c.bf16 %v130_v16, %v129_v15  ;;  %v121_v18 = vld [vmem:[%s603_s3] sm:$0xff]  ;;  %v122_v19 = vld [vmem:[%s603_s3 + $0x8] sm:$0xff]  ;;  %v132_v22 = vld [vmem:[%s604_s4 + $0x18] sm:$0xff] }
   0x9   :  { %400 = vmatprep.subr.bf16.mxu0 %v462_v3  ;;  %v419_v20 = vpack.c.bf16 %v122_v19, %v121_v18  ;;  %v410_v23 = vpack.c.bf16 %v132_v22, %v131_v21  ;;  %v123_v24 = vld [vmem:[%s603_s3 + $0x10] sm:$0xff]  ;;  %v124_v25 = vld [vmem:[%s603_s3 + $0x18] sm:$0xff]  ;;  %v133_v27 = vld [vmem:[%s604_s4 + $0x20] sm:$0xff] }
   0xa   :  { %408 = vmatpush3.bf16.msra.mxu1 %v407_v17  ;;  %v422_v26 = vpack.c.bf16 %v124_v25, %v123_v24  ;;  %v134_v28 = vld [vmem:[%s604_s4 + $0x28] sm:$0xff]  ;;  %v125_v30 = vld [vmem:[%s603_s3 + $0x20] sm:$0xff]  ;;  %v135_v33 = vld [vmem:[%s604_s4 + $0x30] sm:$0xff] }
   0xb   :  { %409 = vmatprep.subr.bf16.mxu1 %v462_v3  ;;  %v413_v29 = vpack.c.bf16 %v134_v28, %v133_v27  ;;  %v126_v31 = vld [vmem:[%s603_s3 + $0x28] sm:$0xff]  ;;  %v136_v34 = vld [vmem:[%s604_s4 + $0x38] sm:$0xff]  ;;  %v127_v36 = vld [vmem:[%s603_s3 + $0x30] sm:$0xff] }
   0xc   :  { %402 = vmatpush3.bf16.msra.mxu0 %v401_v10  ;;  %v425_v32 = vpack.c.bf16 %v126_v31, %v125_v30  ;;  %v416_v35 = vpack.c.bf16 %v136_v34, %v135_v33  ;;  %v128_v37 = vld [vmem:[%s603_s3 + $0x38] sm:$0xff]  ;;  %v304_v39 = vld [vmem:[%s602_s2] ss:$0 sm:$0xff]  ;;  %s465_s2 = smov [#allocation2]  }
   0xd   :  { %403 = vmatprep.subr.bf16.mxu0 %v462_v3  ;;  %v428_v38 = vpack.c.bf16 %v128_v37, %v127_v36  ;;  %v309_v51 = vld [vmem:[%s605_s5] ss:$0 sm:$0xff]  ;;  %s296_s21 = sshll.u32 %s465_s2, 4  ;;  %s297_s21 = int_to_ptr.vmem [resolvable:$true] %s296_s21 }
   0xe   :  { %411 = vmatpush3.bf16.msra.mxu1 %v410_v23  ;;  %s438_s22 = scalar_lea.vmem %s297_s21, 32  ;;  %p443_p1 = scmp.lt.s32.totalorder %s297_s21, %s297_s21 }
   0xf   :  { %412 = vmatprep.subr.bf16.mxu1 %v462_v3  ;;  %p439_p0 = scmp.ne.s32.totalorder %s297_s21, %s438_s22  ;;  %p444_p2 = scmp.lt.s32.totalorder %s438_s22, %s438_s22 }
  0x10   :  { %405 = vmatpush3.bf16.msra.mxu0 %v404_v13 }
  0x11   :  { %418 = vmatprep.subr.bf16.mxu0 %v462_v3  ;;  %p445_p3 = por %p444_p2, %p443_p1 }
  0x12   :  { %414 = vmatpush3.bf16.msra.mxu1 %v413_v29 }
  0x13   :  { %354 = vmatmul.mubr.msk.f32.vlgmr.msra.gmra.mrb[0].mxu0 %vm40_vm1, %v24_v14  ;;  %415 = vmatprep.subr.bf16.mxu1 %v462_v3  ;;  %p446_p4 = pnand %p445_p3, %p439_p0 }
  0x14   :  { %391 = vmatprep.mubr.msk.f32.mxu0 %vm463_vm0, %v464_v6  ;;  %420 = vmatpush3.bf16.msra.mxu0 %v419_v20 }
  0x15   :  { %421 = vmatprep.subr.bf16.mxu0 %v462_v3 }
  0x16   :  { %417 = vmatpush3.bf16.msra.mxu1 %v416_v35 }
  0x18   :  { %423 = vmatpush3.bf16.msra.mxu0 %v422_v26 }
  0x19   :  { %424 = vmatprep.subr.bf16.mxu0 %v462_v3  ;;  %373 = vmatmul.mubr.msk.f32.vlgmr.msra.gmra.mrb[0].mxu1 %vm40_vm1, %v24_v14 }
  0x1c   :  { %426 = vmatpush3.bf16.msra.mxu0 %v425_v32 }
  0x1d   :  { %427 = vmatprep.subr.bf16.mxu0 %v462_v3 }
  0x20   :  { %429 = vmatpush3.bf16.msra.mxu0 %v428_v38 }
  0xe6   :  { %v110_v40 = vpop.f32.mrb[0].mxu0 }
  0xe7   :  { %v111_v41 = vadd.f32 %v304_v39, %v110_v40  ;;  %v355_v42 = vpop.f32.mrb[1].mxu0 }
  0xe9   :  { %v306_v43 = vmul.f32 -1.442695, %v111_v41 }
  0xeb   :  { %434 = vpow2.f32 %v306_v43 }
  0xec   :  { %v203_v48 = vpop.f32.mrb[0].mxu1 }
  0xed   :  { %v374_v49 = vpop.f32.mrb[1].mxu1 }
  0xf5   :  { %v435_v44 = vpop.eup %434 }
  0xf6   :  { %v117_v45 = vadd.f32 1.0, %v435_v44 }
  0xf8   :  { %436 = vrcp.f32 %v117_v45 }
 0x102   :  { %v437_v46 = vpop.eup %436 }
 0x103   :  { %v120_v47 = vmul.f32 %v437_v46, %v111_v41 }
 0x105   :  { %392 = vmatmul.mubr.msk.f32.vlgmr.msra.gmra.mrb[2].mxu0 %vm40_vm1, %v120_v47 }
 0x1d8   :  { %v276_v50 = vpop.f32.mrb[2].mxu0 }
 0x1d9   :  { %v277_v52 = vadd.f32 %v276_v50, %v203_v48  ;;  %v393_v53 = vpop.f32.mrb[3].mxu0 }
 0x1db   :  { %v287_v54 = vadd.f32 %v309_v51, %v277_v52 }
 0x1dd   :  { %289 = vst.msk [vmem:[#allocation2] sm:$0x3] %vm288_vm2, %v287_v54 }
 0x1de   :  { %449 = shalt.err (!%p446_p4)
}
 0x1df   :  { %s450_s25 = scalar_lea.hbm %s606_s6, 32 }
 0x1e0   :  { %p451_p5 = scmp.ne.s32.totalorder %s606_s6, %s450_s25  ;;  %p454_p6 = scmp.lt.u32.totalorder %s450_s25, %s606_s6 }
 0x1e2   :  { %p456_p7 = pnand %p454_p6, %p451_p5 }
 0x1e4   :  { %459 = shalt.err (!%p456_p7)
}
 0x1e5   :  { %299 = dma.vmem_to_hbm [thread:$0]  %s297_s21, 32, %s606_s6, [#allocation3]  }
 0x1e6   :  { %460 = dma.done.wait [#allocation3], 32  }
 0x1e7   :  { %461 = vsyncadd [#allocation3], 4294967264 }
 0x1e8   :  { %303 = vsyncpa [#allocation3], 1 }

</bundles_post_ra>
